<compile_context>
chip_gen: v5e
topology: v5e:2x2
jax: 0.10.0
libtpu: 0.0.40
codegen_flags: <defaults>
</compile_context>

<pallas_src>
import jax
import jax.numpy as jnp
from jax.experimental import pallas as pl
from jax.experimental.pallas import tpu as pltpu


def _cdiv(a, b):
    return -(-a // b)


def _round_up(x, m):
    return ((x + m - 1) // m) * m


def _make_kernel(inv_w, B, Bt, nb_inner, needs_mask):
    def kernel(x_ref, w1_ref, b1_ref, o_ref):
        # x_ref : (Bt, CH, W)  input tile, native dtype (W on the lane axis)
        # w1_ref: (4, CH)      fc1 weight (CH on the lane axis)
        # b1_ref: (4,)         fc1 bias in SMEM
        # o_ref : (1, 1, 4)    per-split partial: sum_b tanh(fc1(mean_W x_b))
        i = pl.program_id(1)

        @pl.when(i == 0)
        def _():
            o_ref[...] = jnp.zeros_like(o_ref)

        # Mean over W == lane-axis reduce (XLU); 1/W folded in as a multiply.
        x = x_ref[...].astype(jnp.float32)           # (Bt, CH, W)
        m = jnp.sum(x, axis=-1) * inv_w               # (Bt, CH), CH on lanes

        if needs_mask:
            # Mask rows past B (partial boundary blocks and clamped duplicate
            # blocks).  Uses the UNclamped logical block index so a clamped
            # duplicate block contributes exactly zero.
            s = pl.program_id(0)
            logical_block = s * nb_inner + i
            row0 = logical_block * Bt
            rows = row0 + jax.lax.broadcasted_iota(jnp.int32, (Bt, 1), 0)
            valid = rows < B                          # (Bt, 1) bool
            m = jnp.where(valid, m, 0.0)              # kill garbage/pad rows
            valid_f = valid.astype(jnp.float32)

        # fc1 (N=4 -> far too narrow for the MXU) as 4 broadcast-mul + lane
        # reduces, tanh on the EUP, then reduce over the batch rows.
        cols = []
        for j in range(4):                            # static unroll
            hj = jnp.sum(m * w1_ref[j:j + 1, :], axis=-1, keepdims=True)  # (Bt,1)
            tj = jnp.tanh(hj + b1_ref[j])             # SMEM scalar bias
            if needs_mask:
                tj = tj * valid_f
            cols.append(jnp.sum(tj, axis=0, keepdims=True))               # (1,1)
        o_ref[...] += jnp.concatenate(cols, axis=-1).reshape(o_ref.shape)

    return kernel


def _vmem_budget():
    # Generation-aware: v7x has 64 MiB VMEM/TC, v5e/v6e have 128 MiB.
    cap = 128 * 1024 * 1024
    try:
        cap = int(getattr(pltpu.get_tpu_info(), "vmem_capacity_bytes", cap))
    except Exception:
        pass
    vmem_limit = min(cap * 3 // 4, 96 * 1024 * 1024)    # v7x->48MiB, v5e/v6e->96MiB
    tile_cap = min(vmem_limit // 6, 16 * 1024 * 1024)   # per x tile; 2x-buffered
    return vmem_limit, tile_cap                         # DMA bufs + f32 temp fit


def _pick_batch_tile(B, CH, W, tile_cap):
    # VMEM footprint of one (Bt, CH, W) f32 tile with (8, 128) lane padding.
    per_row = _round_up(CH, 8) * _round_up(W, 128) * 4
    return int(max(1, min(B, tile_cap // per_row)))


def my_channel_attention(x, w1, b1, w2, b2, *, batch_tile=None, num_splits=None):
    """x: (B, C, H, W); w1: (4, C*H); b1: (4,); w2: (C*H, 4); b2: (C*H,).

    Returns (C*H,) float32, matching MyChannelAttention.forward.
    """
    B, C, H, W = x.shape
    CH = C * H
    assert w1.shape == (4, CH) and b1.shape == (4,)
    assert w2.shape == (CH, 4) and b2.shape == (CH,)

    # Free reshape (adjacent contiguous dims collapse): no HBM transpose/copy.
    x3 = x.reshape(B, CH, W)

    w1f = w1.astype(jnp.float32)        # (4, CH) -> VMEM, CH on lanes
    b1f = b1.astype(jnp.float32)        # (4,)    -> SMEM scalars

    vmem_limit, tile_cap = _vmem_budget()
    if batch_tile is None:
        batch_tile = _pick_batch_tile(B, CH, W, tile_cap)
    Bt = max(1, int(batch_tile))

    nb_total = _cdiv(B, Bt)
    # Outer "parallel" axis: on v7x the 2 TensorCores each stream half of the
    # batch; on 1-TC chips (v5e/v6e) it simply runs sequentially (no cost).
    nsplit = num_splits if num_splits is not None else (2 if nb_total >= 2 else 1)
    nsplit = max(1, min(int(nsplit), nb_total))
    nb_inner = _cdiv(nb_total, nsplit)
    needs_clamp = nsplit * nb_inner > nb_total          # avoid fully-OOB DMA
    needs_mask = (nsplit * nb_inner * Bt) != B           # partial/duplicate rows

    if needs_clamp:
        def x_map(s, i):
            return (jnp.minimum(s * nb_inner + i, nb_total - 1), 0, 0)
    else:
        def x_map(s, i):
            return (s * nb_inner + i, 0, 0)

    kernel = _make_kernel(inv_w=1.0 / W, B=B, Bt=Bt, nb_inner=nb_inner,
                          needs_mask=needs_mask)

    # TODO(synk): w1f/b1f are loop-invariant; pipeline_mode=pl.Buffered(1) (or a
    # one-shot manual copy into scratch) would reclaim their second VMEM buffer
    # -- only matters for very large CH, so left at default buffering here.
    # TODO(synk): if the x DMA is ever exposed at grid-step boundaries, sweep
    # pipeline_mode=pl.Buffered(3) on the x BlockSpec (budget vs the v7x cap).
    partial = pl.pallas_call(
        kernel,
        out_shape=jax.ShapeDtypeStruct((nsplit, 1, 4), jnp.float32),
        grid=(nsplit, nb_inner),
        in_specs=[
            pl.BlockSpec((Bt, CH, W), x_map),                       # x tile
            pl.BlockSpec((4, CH), lambda s, i: (0, 0)),             # fc1 weight
            pl.BlockSpec(memory_space=pltpu.MemorySpace.SMEM),      # fc1 bias
        ],
        out_specs=pl.BlockSpec((1, 1, 4), lambda s, i: (s, 0, 0)),
        compiler_params=pltpu.CompilerParams(
            dimension_semantics=("parallel", "arbitrary"),
            vmem_limit_bytes=int(vmem_limit),
        ),
    )(x3, w1f, b1f)

    # Epilogue in plain JAX (~4*CH flops): the batch mean commutes with the
    # affine fc2, so fc2 runs exactly once on a (4,)-vector.
    hbar = jnp.sum(partial.reshape(nsplit, 4), axis=0) * (1.0 / B)   # (4,)
    return w2.astype(jnp.float32) @ hbar + b2.astype(jnp.float32)    # (CH,)


def _reference(x, w1, b1, w2, b2):
    # Pure-JAX mirror of the PyTorch forward.
    B = x.shape[0]
    m = jnp.mean(jnp.transpose(x, (0, 1, 3, 2)), axis=2).reshape(B, -1)  # (B, CH)
    h = jnp.tanh(m @ w1.T + b1)
    y = h @ w2.T + b2
    return jnp.mean(y, axis=0)


if __name__ == "__main__":
    # Small shapes: B=5, C=4, H=8, W=16 -> channels_num = C*H = 32.
    B, C, H, W = 5, 4, 8, 16
    CH = C * H

    key = jax.random.PRNGKey(0)
    kx, k1, k2, k3, k4 = jax.random.split(key, 5)

    x = jax.random.normal(kx, (B, C, H, W), dtype=jnp.float32)

    # Deterministic PyTorch nn.Linear-style uniform init bounds.
    bound1 = 1.0 / (CH ** 0.5)
    w1 = jax.random.uniform(k1, (4, CH), jnp.float32, -bound1, bound1)
    b1 = jax.random.uniform(k2, (4,), jnp.float32, -bound1, bound1)
    bound2 = 1.0 / (4 ** 0.5)
    w2 = jax.random.uniform(k3, (CH, 4), jnp.float32, -bound2, bound2)
    b2 = jax.random.uniform(k4, (CH,), jnp.float32, -bound2, bound2)

    ref = _reference(x, w1, b1, w2, b2)

    # Auto config: whole batch in one block, single split.
    out_auto = jax.block_until_ready(my_channel_attention(x, w1, b1, w2, b2))
    # Forced Bt=3: 2 blocks over 2 parallel splits, partial last block (masking).
    out_mask = jax.block_until_ready(
        my_channel_attention(x, w1, b1, w2, b2, batch_tile=3))
    # Forced Bt=2: 3 blocks over 2 splits -> clamped duplicate block + masking.
    out_clamp = jax.block_until_ready(
        my_channel_attention(x, w1, b1, w2, b2, batch_tile=2))

    for name, out in (("auto", out_auto), ("mask", out_mask), ("clamp", out_clamp)):
        assert out.shape == (CH,), name
        assert jnp.allclose(out, ref, atol=2e-5, rtol=2e-5), f"{name} mismatch"

    print("KERNEL_OK")
</pallas_src>

<mosaic_0001>
module attributes {stable_mosaic.version = 11 : i64} {
  func.func @kernel(%arg0: i32, %arg1: i32, %arg2: memref<5x32x16xf32, #tpu.memory_space<vmem>>, %arg3: memref<4x32xf32, #tpu.memory_space<vmem>>, %arg4: memref<4xf32, #tpu.memory_space<smem>>, %arg5: memref<1x1x4xf32, #tpu.memory_space<vmem>>) attributes {dimension_semantics = [#tpu.dimension_semantics<parallel>, #tpu.dimension_semantics<arbitrary>], iteration_bounds = array<i64: 1, 1>, scalar_prefetch = 0 : i64, scratch_operands = 0 : i64, tpu.core_type = #tpu.core_type<tc>, window_params = [{transform_indices = @transform_0, window_bounds = array<i64: 5, 32, 16>}, {pipeline_mode = #tpu.pipeline_mode<synchronous>, transform_indices = @transform_1, window_bounds = array<i64: 4, 32>}, {transform_indices = @transform_2, window_bounds = array<i64: 4>}, {transform_indices = @transform_3, window_bounds = array<i64: 1, 1, 4>}]} {
    %c0_i32 = arith.constant 0 : i32
    %0 = arith.cmpi eq, %arg1, %c0_i32 : i32
    %1 = arith.extui %0 : i1 to i32
    %c0_i32_0 = arith.constant 0 : i32
    %2 = arith.cmpi ne, %1, %c0_i32_0 : i32
    scf.if %2 {
      %cst_27 = arith.constant 0.000000e+00 : f32
      %56 = vector.broadcast %cst_27 : f32 to vector<1x1x4xf32>
      %c0_28 = arith.constant 0 : index
      %c0_29 = arith.constant 0 : index
      %c0_30 = arith.constant 0 : index
      %57 = vector.load %arg5[%c0_28, %c0_29, %c0_30] : memref<1x1x4xf32, #tpu.memory_space<vmem>>, vector<1x1x4xf32>
      tpu.vector_store %arg5[%c0_28, %c0_29, %c0_30], %56 {strides = array<i32>} : memref<1x1x4xf32, #tpu.memory_space<vmem>>, vector<1x1x4xf32>,
    } else {
    }
    %c0 = arith.constant 0 : index
    %c0_1 = arith.constant 0 : index
    %c0_2 = arith.constant 0 : index
    %3 = vector.load %arg2[%c0, %c0_1, %c0_2] : memref<5x32x16xf32, #tpu.memory_space<vmem>>, vector<5x32x16xf32>
    %cst = arith.constant dense<0.000000e+00> : vector<5x32xf32>
    %4 = vector.multi_reduction <add>, %3, %cst [2] : vector<5x32x16xf32> to vector<5x32xf32>
    %cst_3 = arith.constant 6.250000e-02 : f32
    %5 = vector.broadcast %cst_3 : f32 to vector<5x32xf32>
    %6 = arith.mulf %4, %5 : vector<5x32xf32>
    %c0_4 = arith.constant 0 : index
    %c0_5 = arith.constant 0 : index
    %7 = vector.load %arg3[%c0_4, %c0_5] : memref<4x32xf32, #tpu.memory_space<vmem>>, vector<1x32xf32>
    %8 = vector.broadcast %7 : vector<1x32xf32> to vector<5x32xf32>
    %9 = arith.mulf %6, %8 : vector<5x32xf32>
    %cst_6 = arith.constant dense<0.000000e+00> : vector<5xf32>
    %10 = vector.multi_reduction <add>, %9, %cst_6 [1] : vector<5x32xf32> to vector<5xf32>
    %11 = vector.shape_cast %10 : vector<5xf32> to vector<5x1xf32>
    %c0_7 = arith.constant 0 : index
    %12 = memref.load %arg4[%c0_7] : memref<4xf32, #tpu.memory_space<smem>>
    %13 = vector.broadcast %12 : f32 to vector<5x1xf32>
    %14 = arith.addf %11, %13 : vector<5x1xf32>
    %15 = math.tanh %14 : vector<5x1xf32>
    %cst_8 = arith.constant dense<0.000000e+00> : vector<1xf32>
    %16 = vector.multi_reduction <add>, %15, %cst_8 [0] : vector<5x1xf32> to vector<1xf32>
    %17 = vector.shape_cast %16 : vector<1xf32> to vector<1x1xf32>
    %c1 = arith.constant 1 : index
    %c0_9 = arith.constant 0 : index
    %18 = vector.load %arg3[%c1, %c0_9] : memref<4x32xf32, #tpu.memory_space<vmem>>, vector<1x32xf32>
    %19 = vector.broadcast %18 : vector<1x32xf32> to vector<5x32xf32>
    %20 = arith.mulf %6, %19 : vector<5x32xf32>
    %cst_10 = arith.constant dense<0.000000e+00> : vector<5xf32>
    %21 = vector.multi_reduction <add>, %20, %cst_10 [1] : vector<5x32xf32> to vector<5xf32>
    %22 = vector.shape_cast %21 : vector<5xf32> to vector<5x1xf32>
    %c1_11 = arith.constant 1 : index
    %23 = memref.load %arg4[%c1_11] : memref<4xf32, #tpu.memory_space<smem>>
    %24 = vector.broadcast %23 : f32 to vector<5x1xf32>
    %25 = arith.addf %22, %24 : vector<5x1xf32>
    %26 = math.tanh %25 : vector<5x1xf32>
    %cst_12 = arith.constant dense<0.000000e+00> : vector<1xf32>
    %27 = vector.multi_reduction <add>, %26, %cst_12 [0] : vector<5x1xf32> to vector<1xf32>
    %28 = vector.shape_cast %27 : vector<1xf32> to vector<1x1xf32>
    %c2 = arith.constant 2 : index
    %c0_13 = arith.constant 0 : index
    %29 = vector.load %arg3[%c2, %c0_13] : memref<4x32xf32, #tpu.memory_space<vmem>>, vector<1x32xf32>
    %30 = vector.broadcast %29 : vector<1x32xf32> to vector<5x32xf32>
    %31 = arith.mulf %6, %30 : vector<5x32xf32>
    %cst_14 = arith.constant dense<0.000000e+00> : vector<5xf32>
    %32 = vector.multi_reduction <add>, %31, %cst_14 [1] : vector<5x32xf32> to vector<5xf32>
    %33 = vector.shape_cast %32 : vector<5xf32> to vector<5x1xf32>
    %c2_15 = arith.constant 2 : index
    %34 = memref.load %arg4[%c2_15] : memref<4xf32, #tpu.memory_space<smem>>
    %35 = vector.broadcast %34 : f32 to vector<5x1xf32>
    %36 = arith.addf %33, %35 : vector<5x1xf32>
    %37 = math.tanh %36 : vector<5x1xf32>
    %cst_16 = arith.constant dense<0.000000e+00> : vector<1xf32>
    %38 = vector.multi_reduction <add>, %37, %cst_16 [0] : vector<5x1xf32> to vector<1xf32>
    %39 = vector.shape_cast %38 : vector<1xf32> to vector<1x1xf32>
    %c3 = arith.constant 3 : index
    %c0_17 = arith.constant 0 : index
    %40 = vector.load %arg3[%c3, %c0_17] : memref<4x32xf32, #tpu.memory_space<vmem>>, vector<1x32xf32>
    %41 = vector.broadcast %40 : vector<1x32xf32> to vector<5x32xf32>
    %42 = arith.mulf %6, %41 : vector<5x32xf32>
    %cst_18 = arith.constant dense<0.000000e+00> : vector<5xf32>
    %43 = vector.multi_reduction <add>, %42, %cst_18 [1] : vector<5x32xf32> to vector<5xf32>
    %44 = vector.shape_cast %43 : vector<5xf32> to vector<5x1xf32>
    %c3_19 = arith.constant 3 : index
    %45 = memref.load %arg4[%c3_19] : memref<4xf32, #tpu.memory_space<smem>>
    %46 = vector.broadcast %45 : f32 to vector<5x1xf32>
    %47 = arith.addf %44, %46 : vector<5x1xf32>
    %48 = math.tanh %47 : vector<5x1xf32>
    %cst_20 = arith.constant dense<0.000000e+00> : vector<1xf32>
    %49 = vector.multi_reduction <add>, %48, %cst_20 [0] : vector<5x1xf32> to vector<1xf32>
    %50 = vector.shape_cast %49 : vector<1xf32> to vector<1x1xf32>
    %c0_21 = arith.constant 0 : index
    %c0_22 = arith.constant 0 : index
    %c0_23 = arith.constant 0 : index
    %51 = vector.load %arg5[%c0_21, %c0_22, %c0_23] : memref<1x1x4xf32, #tpu.memory_space<vmem>>, vector<1x1x4xf32>
    %52 = tpu.concatenate %17, %28, %39, %50 in 1 : vector<1x1xf32>, vector<1x1xf32>, vector<1x1xf32>, vector<1x1xf32> -> vector<1x4xf32>
    %53 = vector.shape_cast %52 : vector<1x4xf32> to vector<1x1x4xf32>
    %54 = arith.addf %51, %53 : vector<1x1x4xf32>
    %c0_24 = arith.constant 0 : index
    %c0_25 = arith.constant 0 : index
    %c0_26 = arith.constant 0 : index
    %55 = vector.load %arg5[%c0_24, %c0_25, %c0_26] : memref<1x1x4xf32, #tpu.memory_space<vmem>>, vector<1x1x4xf32>
    tpu.vector_store %arg5[%c0_24, %c0_25, %c0_26], %54 {strides = array<i32>} : memref<1x1x4xf32, #tpu.memory_space<vmem>>, vector<1x1x4xf32>,
    return
  }
  func.func @transform_0(%arg0: i32, %arg1: i32) -> (i32, i32, i32) {
    %c1_i32 = arith.constant 1 : i32
    %0 = arith.muli %arg0, %c1_i32 : i32
    %1 = arith.addi %0, %arg1 : i32
    %c0_i32 = arith.constant 0 : i32
    %c0_i32_0 = arith.constant 0 : i32
    %c0_i32_1 = arith.constant 0 : i32
    return %1, %c0_i32, %c0_i32_0 : i32, i32, i32
  }
  func.func @transform_1(%arg0: i32, %arg1: i32) -> (i32, i32) {
    %c0_i32 = arith.constant 0 : i32
    %c0_i32_0 = arith.constant 0 : i32
    %c0_i32_1 = arith.constant 0 : i32
    return %c0_i32, %c0_i32_0 : i32, i32
  }
  func.func @transform_2(%arg0: i32, %arg1: i32) -> i32 {
    %c0_i32 = arith.constant 0 : i32
    %c0_i32_0 = arith.constant 0 : i32
    return %c0_i32 : i32
  }
  func.func @transform_3(%arg0: i32, %arg1: i32) -> (i32, i32, i32) {
    %c0_i32 = arith.constant 0 : i32
    %c0_i32_0 = arith.constant 0 : i32
    %c0_i32_1 = arith.constant 0 : i32
    return %arg0, %c0_i32, %c0_i32_0 : i32, i32, i32
  }
}

</mosaic_0001>

<bundles_post_ra>
// kernel: tpu_custom_call.1
= control target key start
LH: loop header
LB: loop body
LE: loop exit
PB: predicated region body
PF: predicated region fallthrough
CT: control target
= control target key end

     0   :  { %8 = vsyncpa [#allocation4], 0  ;;  %s1532_s0 = inlined_call_operand.vmem [shape: f32[5,32,16], index: 0, kind: input, shape index: {}]   ;;  %s1533_s1 = inlined_call_operand.vmem [shape: f32[4,32], index: 1, kind: input, shape index: {}]   ;;  %s1534_s2 = inlined_call_operand.vmem [shape: f32[4], index: 2, kind: input, shape index: {}]   ;;  %s1535_s3 = inlined_call_operand.hbm [shape: f32[1,1,4], index: 3, kind: output, shape index: {}]  }
   0x1   :  { %9 = vsyncpa [#allocation3], 0  ;;  %s28_s14 = sshll.u32 %s1534_s2, 4  ;;  %s1030_s15 = smov [#allocation2]   ;;  %s29_s14 = int_to_ptr.vmem [resolvable:$true] %s28_s14 }
   0x2   :  { %31 = dma.vmem_to_smem %s29_s14, 16, %s1030_s15, [#allocation4]  }
   0x3   :  { %1026 = dma.done.wait [#allocation4], 16  }
   0x4   :  { %1027 = vsyncadd [#allocation4], 4294967280 }
   0x5   :  { %36 = sfence }
   0x6   :  { %v63_v0 = vld [vmem:[%s1532_s0 + $0x20] sm:$0xff]  ;;  %vm79_vm0 = vcmask 130048   ;;  %v61_v1 = vld [vmem:[%s1532_s0 + $0x10] sm:$0xff]  ;;  %v64_v6 = vld [vmem:[%s1532_s0 + $0x28] sm:$0xff]  ;;  %v163_v18 = vlaneseq  ;;  %v1031_v55 = vmov 0   ;;  %vm300_vm1 = vcmask 195712  }
   0x7   :  { %v59_v2 = vld [vmem:[%s1532_s0] sm:$0xff]  ;;  %v92_v3 = vsel %vm79_vm0, %v63_v0, 0.0  ;;  %v86_v4 = vsel %vm79_vm0, %v61_v1, 0.0  ;;  %v62_v7 = vld [vmem:[%s1532_s0 + $0x18] sm:$0xff]  ;;  %v60_v8 = vld [vmem:[%s1532_s0 + $0x8] sm:$0xff]  ;;  %v95_v9 = vsel %vm79_vm0, %v64_v6, 0.0 }
   0x8   :  { %v80_v5 = vsel %vm79_vm0, %v59_v2, 0.0  ;;  %93 = vadd.xlane.f32.xlu2 %v92_v3  ;;  %87 = vadd.xlane.f32.xlu1 %v86_v4  ;;  %v89_v10 = vsel %vm79_vm0, %v62_v7, 0.0  ;;  %v83_v11 = vsel %vm79_vm0, %v60_v8, 0.0  ;;  %v67_v12 = vld [vmem:[%s1532_s0 + $0x40] sm:$0xff]  ;;  %v66_v13 = vld [vmem:[%s1532_s0 + $0x38] sm:$0xff]  ;;  %v65_v14 = vld [vmem:[%s1532_s0 + $0x30] sm:$0xff] }
   0x9   :  { %81 = vadd.xlane.f32.xlu0 %v80_v5  ;;  %v104_v15 = vsel %vm79_vm0, %v67_v12, 0.0  ;;  %v101_v16 = vsel %vm79_vm0, %v66_v13, 0.0  ;;  %v98_v17 = vsel %vm79_vm0, %v65_v14, 0.0  ;;  %v70_v19 = vld [vmem:[%s1532_s0 + $0x58] sm:$0xff]  ;;  %v69_v20 = vld [vmem:[%s1532_s0 + $0x50] sm:$0xff]  ;;  %v68_v21 = vld [vmem:[%s1532_s0 + $0x48] sm:$0xff] }
   0xa   :  { %v1103_v22 = vshrl.u32 %v163_v18, 7  ;;  %v113_v23 = vsel %vm79_vm0, %v70_v19, 0.0  ;;  %v110_v24 = vsel %vm79_vm0, %v69_v20, 0.0  ;;  %v107_v27 = vsel %vm79_vm0, %v68_v21, 0.0  ;;  %v73_v28 = vld [vmem:[%s1532_s0 + $0x70] sm:$0xff]  ;;  %v72_v29 = vld [vmem:[%s1532_s0 + $0x68] sm:$0xff] }
   0xb   :  { %v71_v30 = vld [vmem:[%s1532_s0 + $0x60] sm:$0xff]  ;;  %v122_v31 = vsel %vm79_vm0, %v73_v28, 0.0  ;;  %v119_v32 = vsel %vm79_vm0, %v72_v29, 0.0  ;;  %v76_v34 = vld [vmem:[%s1532_s0 + $0x88] sm:$0xff]  ;;  %v74_v36 = vld [vmem:[%s1532_s0 + $0x78] sm:$0xff]  ;;  %vm296_vm2 = vcmask 130112  }
   0xc   :  { %954 = vset.pattern.permute.xlu2 %v1103_v22  ;;  %v1109_v25 = vadd.s32 8, %v1103_v22  ;;  %v1112_v26 = vadd.s32 16, %v1103_v22  ;;  %v116_v33 = vsel %vm79_vm0, %v71_v30, 0.0  ;;  %v75_v35 = vld [vmem:[%s1532_s0 + $0x80] sm:$0xff]  ;;  %v131_v37 = vsel %vm79_vm0, %v76_v34, 0.0  ;;  %v78_v40 = vld [vmem:[%s1532_s0 + $0x98] sm:$0xff] }
   0xd   :  { %v128_v38 = vsel %vm79_vm0, %v75_v35, 0.0  ;;  %v125_v39 = vsel %vm79_vm0, %v74_v36, 0.0  ;;  %v77_v41 = vld [vmem:[%s1532_s0 + $0x90] sm:$0xff]  ;;  %v137_v42 = vsel %vm79_vm0, %v78_v40, 0.0  ;;  %v978_v44 = vld [vmem:[%s1533_s1] ss:$0 sm:$0xff] }
   0xe   :  { %955 = vset.pattern.permute.xlu0 %v1109_v25  ;;  %956 = vset.pattern.permute.xlu1 %v1112_v26  ;;  %v134_v43 = vsel %vm79_vm0, %v77_v41, 0.0  ;;  %v1153_v45 = vadd.s32 24, %v1103_v22  ;;  %v1160_v46 = vld [vmem:[%s1533_s1 + $0x1] ss:$0 sm:$0xff]  ;;  %vm304_vm3 = vcmask 261312   ;;  %vm334_vm4 = vcmask 1041409  }
   0xf   :  { %vm336_vm5 = vcmask 1042434   ;;  %vm338_vm6 = vcmask 1043459   ;;  %vm340_vm7 = vcmask 1044484   ;;  %vm343_vm8 = vcmask 258048   ;;  %s347_s5 = sld [smem:[#allocation2]]  ;;  %s1033_s10 = smov [#allocation5]  }
  0x10   :  { %96 = vadd.xlane.f32.xlu2 %v95_v9  ;;  %90 = vadd.xlane.f32.xlu1 %v89_v10  ;;  %s947_s8 = sld [smem:[#allocation2 + $0x1]]  ;;  %vm351_vm9 = vcmask 1044480   ;;  %vm915_vm10 = vcmask 7168   ;;  %vm917_vm11 = vcmask 15360   ;;  %vm57_vm12 = vcmask 24576   ;;  %s929_s11 = sshll.u32 %s1033_s10, 4  ;;  %s930_s11 = int_to_ptr.vmem [resolvable:$true] %s929_s11 }
  0x11   :  { %84 = vadd.xlane.f32.xlu0 %v83_v11  ;;  %s949_s9 = sld [smem:[#allocation2 + $0x3]]  ;;  %vm919_vm13 = vcmask 23552   ;;  %s931_s14 = sshll.u32 %s1535_s3, 4  ;;  %s932_s14 = int_to_ptr.hbm [resolvable:$true] %s931_s14 }
  0x18   :  { %105 = vadd.xlane.f32.xlu2 %v104_v15  ;;  %102 = vadd.xlane.f32.xlu1 %v101_v16 }
  0x19   :  { %99 = vadd.xlane.f32.xlu0 %v98_v17 }
  0x20   :  { %114 = vadd.xlane.f32.xlu2 %v113_v23  ;;  %111 = vadd.xlane.f32.xlu1 %v110_v24 }
  0x21   :  { %108 = vadd.xlane.f32.xlu0 %v107_v27 }
  0x28   :  { %123 = vadd.xlane.f32.xlu2 %v122_v31  ;;  %120 = vadd.xlane.f32.xlu1 %v119_v32 }
  0x29   :  { %117 = vadd.xlane.f32.xlu0 %v116_v33 }
  0x30   :  { %132 = vadd.xlane.f32.xlu2 %v131_v37  ;;  %129 = vadd.xlane.f32.xlu1 %v128_v38 }
  0x31   :  { %126 = vadd.xlane.f32.xlu0 %v125_v39 }
  0x38   :  { %138 = vadd.xlane.f32.xlu1 %v137_v42 }
  0x39   :  { %135 = vadd.xlane.f32.xlu0 %v134_v43 }
  0x48   :  { %167 = vperm.xlu2 %954, %v978_v44  }
  0x4d   :  { %173 = vperm.xlu0 %955, %v978_v44  }
  0x50   :  { %957 = vset.pattern.permute.xlu2 %v1153_v45 }
  0x51   :  { %179 = vperm.xlu1 %956, %v978_v44  }
  0x55   :  { %960 = vset.pattern.permute.xlu0 %v1103_v22 }
  0x58   :  { %185 = vperm.xlu2 %957, %v978_v44  }
  0x59   :  { %959 = vset.pattern.permute.xlu1 %v1031_v55 }
  0x5d   :  { %366 = vperm.xlu0 %960, %v1160_v46  }
  0x60   :  { %958 = vset.pattern.permute.xlu2 %v1031_v55 }
  0x65   :  { %963 = vset.pattern.permute.xlu0 %v1153_v45 }
  0x6d   :  { %384 = vperm.xlu0 %963, %v1160_v46  }
  0x75   :  { %964 = vset.pattern.permute.xlu0 %v1031_v55 }
  0x7b   :  { %v94_v47 = vpop.xlane.xlu2 %93  ;;  %v88_v49 = vpop.xlane.xlu1 %87 }
  0x7c   :  { %v82_v48 = vpop.xlane.xlu0 %81  ;;  %v1170_v0 = vmul.f32 0.0625, %v94_v47  ;;  %v1188_v19 = vmul.f32 0.0625, %v88_v49 }
  0x7d   :  { %v1172_v1 = vmul.f32 0.0625, %v82_v48 }
  0x83   :  { %v97_v50 = vpop.xlane.xlu2 %96  ;;  %v91_v52 = vpop.xlane.xlu1 %90 }
  0x84   :  { %v85_v51 = vpop.xlane.xlu0 %84  ;;  %v1193_v27 = vmul.f32 0.0625, %v91_v52  ;;  %v1197_v30 = vmul.f32 0.0625, %v97_v50 }
  0x85   :  { %v1182_v13 = vmul.f32 0.0625, %v85_v51 }
  0x8b   :  { %v106_v53 = vpop.xlane.xlu2 %105  ;;  %v103_v56 = vpop.xlane.xlu1 %102 }
  0x8c   :  { %v100_v54 = vpop.xlane.xlu0 %99  ;;  %v1174_v2 = vmul.f32 0.0625, %v106_v53  ;;  %v1206_v36 = vmul.f32 0.0625, %v103_v56 }
  0x8d   :  { %v1202_v33 = vmul.f32 0.0625, %v100_v54 }
  0x93   :  { %v115_v57 = vpop.xlane.xlu2 %114  ;;  %v112_v60 = vpop.xlane.xlu1 %111 }
  0x94   :  { %v109_v58 = vpop.xlane.xlu0 %108  ;;  %v1209_v38 = vmul.f32 0.0625, %v115_v57  ;;  %v1215_v42 = vmul.f32 0.0625, %v112_v60 }
  0x95   :  { %v1184_v14 = vmul.f32 0.0625, %v109_v58 }
  0x9b   :  { %v124_v59 = vpop.xlane.xlu2 %123  ;;  %v121_v63 = vpop.xlane.xlu1 %120 }
  0x9c   :  { %v118_v61 = vpop.xlane.xlu0 %117  ;;  %v1218_v44 = vmul.f32 0.0625, %v124_v59  ;;  %v1221_v48 = vmul.f32 0.0625, %v121_v63 }
  0x9d   :  { %v1190_v21 = vmul.f32 0.0625, %v118_v61 }
  0xa3   :  { %v1168_v62 = vpop.xlane.xlu2 %132  ;;  %v130_v8 = vpop.xlane.xlu1 %129 }
  0xa4   :  { %v127_v4 = vpop.xlane.xlu0 %126  ;;  %v1179_v9 = vmul.f32 0.0625, %v130_v8  ;;  %v1225_v50 = vmul.f32 0.0625, %v1168_v62 }
  0xa5   :  { %v1199_v31 = vmul.f32 0.0625, %v127_v4 }
  0xab   :  { %v168_v3 = vpop.permute.xlu2 %167  ;;  %v139_v12 = vpop.xlane.xlu1 %138 }
  0xac   :  { %v199_v5 = vmul.f32 %v168_v3, %v1174_v2  ;;  %v195_v6 = vmul.f32 %v168_v3, %v1170_v0  ;;  %v191_v7 = vmul.f32 %v168_v3, %v1172_v1  ;;  %v207_v10 = vmul.f32 %v168_v3, %v1179_v9  ;;  %v136_v11 = vpop.xlane.xlu0 %135 }
  0xad   :  { %v203_v28 = vmul.f32 %v168_v3, %v1190_v21  ;;  %v1211_v39 = vmul.f32 0.0625, %v136_v11  ;;  %v1228_v52 = vmul.f32 0.0625, %v139_v12  ;;  %v1247_v3 = vand.u32 127, %v163_v18 }
  0xae   :  { %256 = vperm.xlu1 %959, %v199_v5   ;;  %244 = vperm.xlu0 %964, %v195_v6  }
  0xaf   :  { %232 = vperm.xlu2 %958, %v191_v7   ;;  %v1250_v4 = vadd.s32 4294967280, %v1247_v3  ;;  %v1253_v5 = vadd.s32 4294967288, %v1247_v3 }
  0xb3   :  { %v186_v24 = vpop.permute.xlu2 %185 }
  0xb4   :  { %v194_v29 = vmul.f32 %v186_v24, %v1193_v27  ;;  %v206_v34 = vmul.f32 %v186_v24, %v1199_v31  ;;  %v198_v37 = vmul.f32 %v186_v24, %v1206_v36  ;;  %v202_v41 = vmul.f32 %v186_v24, %v1209_v38 }
  0xb5   :  { %v210_v53 = vmul.f32 %v186_v24, %v1228_v52 }
  0xb7   :  { %280 = vperm.xlu2 %958, %v207_v10  }
  0xbf   :  { %v174_v15 = vpop.permute.xlu0 %173 }
  0xc0   :  { %v200_v16 = vmul.f32 %v174_v15, %v1184_v14  ;;  %v192_v17 = vmul.f32 %v174_v15, %v1182_v13  ;;  %v196_v32 = vmul.f32 %v174_v15, %v1197_v30  ;;  %v204_v49 = vmul.f32 %v174_v15, %v1221_v48 }
  0xc1   :  { %v208_v51 = vmul.f32 %v174_v15, %v1225_v50 }
  0xc2   :  { %259 = vperm.xlu0 %964, %v200_v16   ;;  %235 = vperm.xlu1 %959, %v192_v17  }
  0xc3   :  { %v180_v20 = vpop.permute.xlu1 %179 }
  0xc4   :  { %v193_v23 = vmul.f32 %v180_v20, %v1188_v19  ;;  %v197_v35 = vmul.f32 %v180_v20, %v1202_v33  ;;  %v209_v40 = vmul.f32 %v180_v20, %v1211_v39  ;;  %v201_v43 = vmul.f32 %v180_v20, %v1215_v42 }
  0xc5   :  { %v205_v47 = vmul.f32 %v180_v20, %v1218_v44 }
  0xc6   :  { %238 = vperm.xlu2 %958, %v193_v23   ;;  %v1262_v23 = vadd.s32 4294967272, %v1247_v3 }
  0xca   :  { %268 = vperm.xlu0 %964, %v203_v28   ;;  %241 = vperm.xlu1 %959, %v194_v29  }
  0xce   :  { %247 = vperm.xlu2 %958, %v196_v32  }
  0xcf   :  { %v1231_v54 = vpop.permute.xlu0 %366 }
  0xd0   :  { %v394_v56 = vmul.f32 %v1231_v54, %v1170_v0  ;;  %v390_v58 = vmul.f32 %v1231_v54, %v1172_v1 }
  0xd2   :  { %277 = vperm.xlu0 %964, %v206_v34   ;;  %250 = vperm.xlu1 %959, %v197_v35  }
  0xd6   :  { %253 = vperm.xlu2 %958, %v198_v37  }
  0xda   :  { %286 = vperm.xlu0 %964, %v209_v40   ;;  %265 = vperm.xlu1 %959, %v202_v41  }
  0xde   :  { %262 = vperm.xlu2 %958, %v201_v43  }
  0xdf   :  { %v1244_v63 = vpop.permute.xlu0 %384 }
  0xe2   :  { %274 = vperm.xlu1 %959, %v205_v47  }
  0xe6   :  { %271 = vperm.xlu2 %958, %v204_v49  }
  0xea   :  { %283 = vperm.xlu1 %959, %v208_v51  }
  0xee   :  { %289 = vperm.xlu2 %958, %v210_v53  }
  0xf2   :  { %443 = vperm.xlu1 %959, %v394_v56  }
  0xf6   :  { %961 = vset.pattern.permute.xlu2 %v1109_v25 }
  0xfe   :  { %372 = vperm.xlu2 %961, %v1160_v46  }
 0x106   :  { %962 = vset.pattern.permute.xlu2 %v1112_v26 }
 0x109   :  { %v233_v57 = vpop.permute.xlu2 %232 }
 0x10a   :  { %v293_v7 = vperm.slane %v233_v57, %v1247_v3 }
 0x10e   :  { %378 = vperm.xlu2 %962, %v1160_v46  }
 0x111   :  { %v1242_v59 = vpop.permute.xlu2 %280 }
 0x116   :  { %965 = vset.pattern.permute.xlu2 %v1031_v55 }
 0x117   :  { %431 = vperm.xlu2 %965, %v390_v58  }
 0x120   :  { %v239_v60 = vpop.permute.xlu2 %238  ;;  %v257_v62 = vpop.permute.xlu1 %256 }
 0x121   :  { %v245_v8 = vpop.permute.xlu0 %244  ;;  %v299_v11 = vperm.slane %v239_v60, %v1250_v4  ;;  %v313_v56 = vperm.slane %v257_v62, %v1247_v3 }
 0x122   :  { %v306_v24 = vperm.slane %v245_v8, %v1247_v3 }
 0x128   :  { %v248_v61 = vpop.permute.xlu2 %247 }
 0x129   :  { %v307_v20 = vperm.slane %v248_v61, %v1253_v5 }
 0x12b   :  { %v308_v34 = vsel %vm296_vm2, %v307_v20, %v306_v24 }
 0x130   :  { %v254_v46 = vpop.permute.xlu2 %253 }
 0x131   :  { %v311_v35 = vperm.slane %v254_v46, %v1262_v23 }
 0x134   :  { %v236_v6 = vpop.permute.xlu1 %235  ;;  %v260_v17 = vpop.permute.xlu0 %259 }
 0x135   :  { %v295_v10 = vperm.slane %v236_v6, %v1253_v5  ;;  %v314_v49 = vperm.slane %v260_v17, %v1253_v5 }
 0x137   :  { %v297_v18 = vsel %vm296_vm2, %v295_v10, %v293_v7  ;;  %v315_v58 = vsel %vm296_vm2, %v314_v49, %v313_v56 }
 0x138   :  { %v301_v12 = vsel %vm300_vm1, %v299_v11, %v297_v18  ;;  %v263_v15 = vpop.permute.xlu2 %262 }
 0x139   :  { %v316_v53 = vperm.slane %v263_v15, %v1250_v4 }
 0x13b   :  { %v317_v61 = vsel %vm300_vm1, %v316_v53, %v315_v58 }
 0x13c   :  { %v242_v16 = vpop.permute.xlu1 %241  ;;  %v269_v40 = vpop.permute.xlu0 %268 }
 0x13d   :  { %v303_v28 = vperm.slane %v242_v16, %v1262_v23  ;;  %v320_v11 = vperm.slane %v269_v40, %v1247_v3 }
 0x13f   :  { %v305_v43 = vsel %vm304_vm3, %v303_v28, %v301_v12 }
 0x140   :  { %v272_v37 = vpop.permute.xlu2 %271 }
 0x141   :  { %v321_v10 = vperm.slane %v272_v37, %v1253_v5 }
 0x143   :  { %v322_v12 = vsel %vm296_vm2, %v321_v10, %v320_v11  ;;  %v401_v10 = vmul.f32 %v1244_v63, %v1209_v38  ;;  %v402_v11 = vmul.f32 %v1231_v54, %v1190_v21 }
 0x144   :  { %v251_v29 = vpop.permute.xlu1 %250  ;;  %v278_v8 = vpop.permute.xlu0 %277 }
 0x145   :  { %v309_v32 = vperm.slane %v251_v29, %v1250_v4  ;;  %v325_v15 = vperm.slane %v278_v8, %v1262_v23  ;;  %v409_v8 = vmul.f32 %v1244_v63, %v1228_v52 }
 0x147   :  { %v310_v41 = vsel %vm300_vm1, %v309_v32, %v308_v34  ;;  %v327_v34 = vperm.slane %v1242_v59, %v1247_v3 }
 0x148   :  { %v312_v47 = vsel %vm304_vm3, %v311_v35, %v310_v41  ;;  %v290_v6 = vpop.permute.xlu2 %289 }
 0x149   :  { %v335_v51 = vsel %vm334_vm4, %v312_v47, %v305_v43  ;;  %v332_v40 = vperm.slane %v290_v6, %v1262_v23  ;;  %v393_v47 = vmul.f32 %v1244_v63, %v1193_v27  ;;  %v406_v6 = vmul.f32 %v1231_v54, %v1179_v9 }
 0x14c   :  { %v266_v57 = vpop.permute.xlu1 %265  ;;  %v287_v29 = vpop.permute.xlu0 %286 }
 0x14d   :  { %v318_v60 = vperm.slane %v266_v57, %v1262_v23  ;;  %v330_v37 = vperm.slane %v287_v29, %v1250_v4 }
 0x14f   :  { %v319_v46 = vsel %vm304_vm3, %v318_v60, %v317_v61  ;;  %v397_v61 = vmul.f32 %v1244_v63, %v1206_v36 }
 0x150   :  { %v337_v7 = vsel %vm336_vm5, %v319_v46, %v335_v51  ;;  %v398_v46 = vmul.f32 %v1231_v54, %v1174_v2  ;;  %v980_v54 = vld [vmem:[%s1533_s1 + $0x2] ss:$0 sm:$0xff] }
 0x154   :  { %v275_v18 = vpop.permute.xlu1 %274 }
 0x155   :  { %v323_v62 = vperm.slane %v275_v18, %v1250_v4 }
 0x157   :  { %v324_v16 = vsel %vm300_vm1, %v323_v62, %v322_v12  ;;  %v405_v62 = vmul.f32 %v1244_v63, %v1199_v31 }
 0x158   :  { %v373_v17 = vpop.permute.xlu2 %372  ;;  %v326_v20 = vsel %vm304_vm3, %v325_v15, %v324_v16 }
 0x159   :  { %v391_v24 = vmul.f32 %v373_v17, %v1182_v13  ;;  %v339_v28 = vsel %vm338_vm6, %v326_v20, %v337_v7  ;;  %v395_v57 = vmul.f32 %v373_v17, %v1197_v30  ;;  %v403_v60 = vmul.f32 %v373_v17, %v1221_v48 }
 0x15a   :  { %v399_v7 = vmul.f32 %v373_v17, %v1184_v14  ;;  %v407_v12 = vmul.f32 %v373_v17, %v1225_v50 }
 0x15b   :  { %434 = vperm.xlu2 %965, %v391_v24  }
 0x15c   :  { %v284_v32 = vpop.permute.xlu1 %283 }
 0x15d   :  { %v328_v35 = vperm.slane %v284_v32, %v1253_v5 }
 0x15f   :  { %v329_v41 = vsel %vm296_vm2, %v328_v35, %v327_v34 }
 0x160   :  { %v331_v43 = vsel %vm300_vm1, %v330_v37, %v329_v41 }
 0x161   :  { %v333_v49 = vsel %vm304_vm3, %v332_v40, %v331_v43 }
 0x162   :  { %v341_v51 = vsel %vm340_vm7, %v333_v49, %v339_v28 }
 0x163   :  { %440 = vperm.xlu2 %965, %v393_v47   ;;  %v344_v63 = vsel %vm343_vm8, %v341_v51, 0.0 }
 0x164   :  { %v444_v34 = vpop.permute.xlu1 %443 }
 0x168   :  { %v379_v59 = vpop.permute.xlu2 %378 }
 0x169   :  { %v392_v53 = vmul.f32 %v379_v59, %v1188_v19  ;;  %v400_v56 = vmul.f32 %v379_v59, %v1215_v42  ;;  %v396_v58 = vmul.f32 %v379_v59, %v1202_v33  ;;  %v404_v18 = vmul.f32 %v379_v59, %v1218_v44 }
 0x16a   :  { %v408_v15 = vmul.f32 %v379_v59, %v1211_v39 }
 0x16b   :  { %437 = vperm.xlu0 %964, %v392_v53   ;;  %461 = vperm.xlu1 %959, %v400_v56  }
 0x16c   :  { %446 = vperm.xlu2 %965, %v395_v57  }
 0x171   :  { %v432_v16 = vpop.permute.xlu2 %431 }
 0x173   :  { %449 = vperm.xlu0 %964, %v396_v58   ;;  %470 = vperm.xlu1 %959, %v403_v60  }
 0x174   :  { %452 = vperm.xlu2 %965, %v397_v61   ;;  %v497_v61 = vperm.slane %v444_v34, %v1247_v3 }
 0x17b   :  { %455 = vperm.xlu0 %964, %v398_v46   ;;  %479 = vperm.xlu1 %959, %v406_v6  }
 0x17c   :  { %458 = vperm.xlu2 %965, %v399_v7  }
 0x183   :  { %488 = vperm.xlu1 %959, %v409_v8   ;;  %464 = vperm.xlu0 %964, %v401_v10  }
 0x184   :  { %467 = vperm.xlu2 %965, %v402_v11  }
 0x18b   :  { %473 = vperm.xlu0 %964, %v404_v18   ;;  %967 = vset.pattern.permute.xlu1 %v1109_v25  ;;  %v490_v18 = vperm.slane %v432_v16, %v1247_v3 }
 0x18c   :  { %476 = vperm.xlu2 %965, %v405_v62  }
 0x193   :  { %482 = vperm.xlu0 %964, %v407_v12  }
 0x194   :  { %485 = vperm.xlu2 %965, %v408_v15  }
 0x19c   :  { %966 = vset.pattern.permute.xlu2 %v1103_v22 }
 0x1a4   :  { %551 = vperm.xlu2 %966, %v980_v54  }
 0x1ac   :  { %968 = vset.pattern.permute.xlu2 %v1112_v26 }
 0x1ad   :  { %345 = vadd.xlane.f32.xlu1 %v344_v63 }
 0x1b4   :  { %563 = vperm.xlu2 %968, %v980_v54  }
 0x1b5   :  { %v435_v17 = vpop.permute.xlu2 %434 }
 0x1b6   :  { %v491_v46 = vperm.slane %v435_v17, %v1253_v5 }
 0x1b8   :  { %v492_v17 = vsel %vm296_vm2, %v491_v46, %v490_v18 }
 0x1bc   :  { %970 = vset.pattern.permute.xlu2 %v1031_v55 }
 0x1bd   :  { %v441_v20 = vpop.permute.xlu2 %440 }
 0x1c6   :  { %v447_v24 = vpop.permute.xlu2 %446  ;;  %557 = vperm.xlu1 %967, %v980_v54  }
 0x1c7   :  { %v498_v53 = vperm.slane %v447_v24, %v1253_v5 }
 0x1c9   :  { %v499_v62 = vsel %vm296_vm2, %v498_v53, %v497_v61 }
 0x1ce   :  { %v453_v28 = vpop.permute.xlu2 %452  ;;  %969 = vset.pattern.permute.xlu1 %v1153_v45 }
 0x1cf   :  { %v502_v24 = vperm.slane %v453_v28, %v1262_v23 }
 0x1d6   :  { %569 = vperm.xlu1 %969, %v980_v54   ;;  %v459_v29 = vpop.permute.xlu2 %458 }
 0x1d7   :  { %v505_v8 = vperm.slane %v459_v29, %v1253_v5 }
 0x1dd   :  { %v438_v32 = vpop.permute.xlu0 %437  ;;  %v462_v40 = vpop.permute.xlu1 %461 }
 0x1de   :  { %971 = vset.pattern.permute.xlu1 %v1031_v55  ;;  %v468_v35 = vpop.permute.xlu2 %467  ;;  %v493_v10 = vperm.slane %v438_v32, %v1250_v4  ;;  %v507_v29 = vperm.slane %v462_v40, %v1250_v4 }
 0x1df   :  { %v511_v12 = vperm.slane %v468_v35, %v1247_v3  ;;  %v495_v35 = vperm.slane %v441_v20, %v1262_v23 }
 0x1e0   :  { %v494_v16 = vsel %vm300_vm1, %v493_v10, %v492_v17 }
 0x1e5   :  { %v450_v37 = vpop.permute.xlu0 %449  ;;  %v471_v47 = vpop.permute.xlu1 %470 }
 0x1e6   :  { %v477_v41 = vpop.permute.xlu2 %476  ;;  %v500_v57 = vperm.slane %v450_v37, %v1250_v4  ;;  %v512_v6 = vperm.slane %v471_v47, %v1253_v5 }
 0x1e7   :  { %v516_v37 = vperm.slane %v477_v41, %v1262_v23 }
 0x1e8   :  { %v501_v15 = vsel %vm300_vm1, %v500_v57, %v499_v62  ;;  %v513_v32 = vsel %vm296_vm2, %v512_v6, %v511_v12  ;;  %v496_v57 = vsel %vm304_vm3, %v495_v35, %v494_v16 }
 0x1ed   :  { %v456_v43 = vpop.permute.xlu0 %455  ;;  %v480_v59 = vpop.permute.xlu1 %479 }
 0x1ee   :  { %v486_v51 = vpop.permute.xlu2 %485  ;;  %v504_v58 = vperm.slane %v456_v43, %v1247_v3  ;;  %v503_v43 = vsel %vm304_vm3, %v502_v24, %v501_v15  ;;  %v518_v28 = vperm.slane %v480_v59, %v1247_v3 }
 0x1ef   :  { %v525_v46 = vsel %vm334_vm4, %v503_v43, %v496_v57  ;;  %v981_v57 = vld [vmem:[%s1533_s1 + $0x3] ss:$0 sm:$0xff]  ;;  %s948_s1 = sld [smem:[#allocation2 + $0x2]] }
 0x1f0   :  { %v506_v54 = vsel %vm296_vm2, %v505_v8, %v504_v58  ;;  %v521_v58 = vperm.slane %v486_v51, %v1250_v4 }
 0x1f5   :  { %v465_v49 = vpop.permute.xlu0 %464  ;;  %v489_v47 = vpop.permute.xlu1 %488 }
 0x1f6   :  { %v509_v63 = vperm.slane %v465_v49, %v1262_v23  ;;  %v508_v49 = vsel %vm300_vm1, %v507_v29, %v506_v54  ;;  %v523_v41 = vperm.slane %v489_v47, %v1262_v23 }
 0x1f8   :  { %v510_v40 = vsel %vm304_vm3, %v509_v63, %v508_v49 }
 0x1f9   :  { %v526_v59 = vsel %vm336_vm5, %v510_v40, %v525_v46 }
 0x1fd   :  { %v474_v56 = vpop.permute.xlu0 %473 }
 0x1fe   :  { %v1337_v60 = vpop.permute.xlu2 %551  ;;  %v514_v11 = vperm.slane %v474_v56, %v1250_v4 }
 0x1ff   :  { %v575_v7 = vmul.f32 %v1337_v60, %v1172_v1  ;;  %v579_v62 = vmul.f32 %v1337_v60, %v1170_v0  ;;  %v583_v47 = vmul.f32 %v1337_v60, %v1174_v2  ;;  %v591_v49 = vmul.f32 %v1337_v60, %v1179_v9 }
 0x200   :  { %v515_v34 = vsel %vm300_vm1, %v514_v11, %v513_v32  ;;  %v587_v40 = vmul.f32 %v1337_v60, %v1190_v21  ;;  %v534_v60 = vstv %s947_s8 }
 0x201   :  { %616 = vperm.xlu2 %970, %v575_v7   ;;  %v517_v20 = vsel %vm304_vm3, %v516_v37, %v515_v34 }
 0x202   :  { %v527_v8 = vsel %vm338_vm6, %v517_v20, %v526_v59 }
 0x205   :  { %v483_v53 = vpop.permute.xlu0 %482 }
 0x206   :  { %v519_v56 = vperm.slane %v483_v53, %v1253_v5 }
 0x208   :  { %v520_v61 = vsel %vm296_vm2, %v519_v56, %v518_v28  ;;  %v348_v56 = vstv %s347_s5 }
 0x209   :  { %v522_v6 = vsel %vm300_vm1, %v521_v58, %v520_v61 }
 0x20a   :  { %v524_v7 = vsel %vm304_vm3, %v523_v41, %v522_v6 }
 0x20b   :  { %v528_v10 = vsel %vm340_vm7, %v524_v7, %v527_v8 }
 0x20c   :  { %v530_v51 = vsel %vm343_vm8, %v528_v10, 0.0 }
 0x20d   :  { %531 = vadd.xlane.f32.xlu0 %v530_v51 }
 0x20e   :  { %v564_v11 = vpop.permute.xlu2 %563 }
 0x20f   :  { %v577_v18 = vmul.f32 %v564_v11, %v1188_v19  ;;  %v581_v12 = vmul.f32 %v564_v11, %v1202_v33  ;;  %v589_v34 = vmul.f32 %v564_v11, %v1218_v44  ;;  %v585_v53 = vmul.f32 %v564_v11, %v1215_v42 }
 0x210   :  { %v593_v41 = vmul.f32 %v564_v11, %v1211_v39 }
 0x211   :  { %622 = vperm.xlu2 %970, %v577_v18  }
 0x219   :  { %628 = vperm.xlu2 %970, %v579_v62  }
 0x220   :  { %v346_v15 = vpop.xlane.xlu1 %345 }
 0x221   :  { %634 = vperm.xlu2 %970, %v581_v12   ;;  %v349_v58 = vadd.f32 %v348_v56, %v346_v15 }
 0x223   :  { %982 = vtanh.f32 %v349_v58 }
 0x229   :  { %v983_v61 = vpop.eup %982 }
 0x238   :  { %v558_v54 = vpop.permute.xlu1 %557 }
 0x239   :  { %v584_v63 = vmul.f32 %v558_v54, %v1184_v14  ;;  %v576_v17 = vmul.f32 %v558_v54, %v1182_v13  ;;  %v580_v35 = vmul.f32 %v558_v54, %v1197_v30  ;;  %v588_v37 = vmul.f32 %v558_v54, %v1221_v48 }
 0x23a   :  { %v592_v43 = vmul.f32 %v558_v54, %v1225_v50 }
 0x23b   :  { %643 = vperm.xlu2 %970, %v584_v63   ;;  %619 = vperm.xlu1 %971, %v576_v17  }
 0x248   :  { %v570_v24 = vpop.permute.xlu1 %569 }
 0x249   :  { %v586_v29 = vmul.f32 %v570_v24, %v1209_v38  ;;  %v578_v32 = vmul.f32 %v570_v24, %v1193_v27  ;;  %v582_v16 = vmul.f32 %v570_v24, %v1206_v36  ;;  %v594_v28 = vmul.f32 %v570_v24, %v1228_v52 }
 0x24a   :  { %v590_v20 = vmul.f32 %v570_v24, %v1199_v31 }
 0x24b   :  { %649 = vperm.xlu2 %970, %v586_v29   ;;  %625 = vperm.xlu1 %971, %v578_v32  }
 0x24c   :  { %637 = vperm.xlu0 %964, %v582_v16  }
 0x253   :  { %658 = vperm.xlu2 %970, %v589_v34   ;;  %631 = vperm.xlu1 %971, %v580_v35  }
 0x254   :  { %655 = vperm.xlu0 %964, %v588_v37  }
 0x25b   :  { %667 = vperm.xlu2 %970, %v592_v43   ;;  %640 = vperm.xlu1 %971, %v583_v47  }
 0x25c   :  { %664 = vperm.xlu0 %964, %v591_v49  }
 0x263   :  { %646 = vperm.xlu1 %971, %v585_v53  }
 0x264   :  { %673 = vperm.xlu0 %964, %v594_v28  }
 0x26b   :  { %652 = vperm.xlu1 %971, %v587_v40  }
 0x26c   :  { %973 = vset.pattern.permute.xlu0 %v1109_v25  ;;  %v352_v25 = vsel %vm351_vm9, %v983_v61, 0.0 }
 0x26d   :  { %v353_v6 = vrot.slane %v352_v25, 4 }
 0x26f   :  { %v354_v7 = vadd.f32 %v353_v6, %v352_v25 }
 0x271   :  { %v355_v10 = vrot.slane %v354_v7, 2 }
 0x273   :  { %661 = vperm.xlu1 %971, %v590_v20   ;;  %v356_v18 = vadd.f32 %v355_v10, %v354_v7 }
 0x274   :  { %742 = vperm.xlu0 %973, %v981_v57  }
 0x275   :  { %v357_v15 = vrot.slane %v356_v18, 1 }
 0x277   :  { %v358_v17 = vadd.f32 %v357_v15, %v356_v18 }
 0x27b   :  { %670 = vperm.xlu1 %971, %v593_v41  }
 0x27c   :  { %976 = vset.pattern.permute.xlu0 %v1031_v55 }
 0x280   :  { %v532_v46 = vpop.xlane.xlu0 %531 }
 0x281   :  { %v535_v59 = vadd.f32 %v534_v60, %v532_v46 }
 0x283   :  { %984 = vtanh.f32 %v535_v59  ;;  %972 = vset.pattern.permute.xlu1 %v1103_v22  ;;  %v617_v22 = vpop.permute.xlu2 %616 }
 0x284   :  { %v675_v7 = vperm.slane %v617_v22, %v1247_v3 }
 0x289   :  { %v985_v8 = vpop.eup %984 }
 0x28a   :  { %v537_v51 = vsel %vm351_vm9, %v985_v8, 0.0 }
 0x28b   :  { %v538_v11 = vrot.slane %v537_v51, 4  ;;  %736 = vperm.xlu1 %972, %v981_v57   ;;  %v623_v32 = vpop.permute.xlu2 %622 }
 0x28c   :  { %v678_v22 = vperm.slane %v623_v32, %v1250_v4 }
 0x28d   :  { %v539_v62 = vadd.f32 %v538_v11, %v537_v51 }
 0x28f   :  { %v540_v12 = vrot.slane %v539_v62, 2 }
 0x291   :  { %v541_v54 = vadd.f32 %v540_v12, %v539_v62 }
 0x293   :  { %v542_v63 = vrot.slane %v541_v54, 1  ;;  %974 = vset.pattern.permute.xlu1 %v1112_v26  ;;  %v629_v34 = vpop.permute.xlu2 %628 }
 0x294   :  { %v682_v41 = vperm.slane %v629_v34, %v1247_v3 }
 0x295   :  { %v543_v24 = vadd.f32 %v542_v63, %v541_v54 }
 0x297   :  { %v1410_v29 = vsel %vm915_vm10, %v358_v17, %v543_v24 }
 0x29b   :  { %748 = vperm.xlu1 %974, %v981_v57   ;;  %v635_v47 = vpop.permute.xlu2 %634 }
 0x29c   :  { %v685_v8 = vperm.slane %v635_v47, %v1250_v4 }
 0x2a3   :  { %975 = vset.pattern.permute.xlu1 %v1153_v45  ;;  %v644_v53 = vpop.permute.xlu2 %643 }
 0x2a4   :  { %v690_v10 = vperm.slane %v644_v53, %v1253_v5 }
 0x2ab   :  { %754 = vperm.xlu1 %975, %v981_v57   ;;  %v650_v56 = vpop.permute.xlu2 %649 }
 0x2ad   :  { %v620_v16 = vpop.permute.xlu1 %619 }
 0x2b3   :  { %977 = vset.pattern.permute.xlu1 %v1031_v55  ;;  %v659_v45 = vpop.permute.xlu2 %658  ;;  %v676_v55 = vperm.slane %v620_v16, %v1253_v5  ;;  %v694_v16 = vperm.slane %v650_v56, %v1262_v23 }
 0x2b4   :  { %v699_v34 = vperm.slane %v659_v45, %v1250_v4 }
 0x2b5   :  { %v677_v18 = vsel %vm296_vm2, %v676_v55, %v675_v7 }
 0x2bb   :  { %v668_v54 = vpop.permute.xlu2 %667 }
 0x2bc   :  { %v704_v47 = vperm.slane %v668_v54, %v1253_v5 }
 0x2bd   :  { %v626_v35 = vpop.permute.xlu1 %625 }
 0x2be   :  { %v638_v37 = vpop.permute.xlu0 %637  ;;  %v680_v62 = vperm.slane %v626_v35, %v1262_v23 }
 0x2bf   :  { %v687_v63 = vperm.slane %v638_v37, %v1262_v23  ;;  %v679_v37 = vsel %vm300_vm1, %v678_v22, %v677_v18 }
 0x2c5   :  { %v632_v43 = vpop.permute.xlu1 %631 }
 0x2c6   :  { %v656_v26 = vpop.permute.xlu0 %655  ;;  %v683_v57 = vperm.slane %v632_v43, %v1253_v5 }
 0x2c7   :  { %v697_v11 = vperm.slane %v656_v26, %v1253_v5 }
 0x2c8   :  { %v684_v60 = vsel %vm296_vm2, %v683_v57, %v682_v41 }
 0x2c9   :  { %v686_v12 = vsel %vm300_vm1, %v685_v8, %v684_v60 }
 0x2ca   :  { %v688_v43 = vsel %vm304_vm3, %v687_v63, %v686_v12 }
 0x2cd   :  { %v641_v49 = vpop.permute.xlu1 %640 }
 0x2ce   :  { %v665_v28 = vpop.permute.xlu0 %664  ;;  %v689_v61 = vperm.slane %v641_v49, %v1247_v3 }
 0x2cf   :  { %v703_v35 = vperm.slane %v665_v28, %v1247_v3 }
 0x2d0   :  { %v691_v15 = vsel %vm296_vm2, %v690_v10, %v689_v61 }
 0x2d5   :  { %v647_v40 = vpop.permute.xlu1 %646 }
 0x2d6   :  { %v674_v20 = vpop.permute.xlu0 %673  ;;  %v692_v46 = vperm.slane %v647_v40, %v1250_v4  ;;  %v681_v40 = vsel %vm304_vm3, %v680_v62, %v679_v37 }
 0x2d7   :  { %v708_v28 = vperm.slane %v674_v20, %v1262_v23  ;;  %v710_v45 = vsel %vm334_vm4, %v688_v43, %v681_v40 }
 0x2d8   :  { %v693_v17 = vsel %vm300_vm1, %v692_v46, %v691_v15 }
 0x2d9   :  { %v695_v26 = vsel %vm304_vm3, %v694_v16, %v693_v17 }
 0x2da   :  { %v711_v41 = vsel %vm336_vm5, %v695_v26, %v710_v45 }
 0x2dd   :  { %v653_v58 = vpop.permute.xlu1 %652 }
 0x2de   :  { %v696_v6 = vperm.slane %v653_v58, %v1247_v3  ;;  %v705_v58 = vsel %vm296_vm2, %v704_v47, %v703_v35 }
 0x2e0   :  { %v698_v24 = vsel %vm296_vm2, %v697_v11, %v696_v6 }
 0x2e1   :  { %v700_v49 = vsel %vm300_vm1, %v699_v34, %v698_v24 }
 0x2e5   :  { %v662_v25 = vpop.permute.xlu1 %661 }
 0x2e6   :  { %v1421_v59 = vpop.permute.xlu0 %742 }
 0x2e7   :  { %v761_v51 = vmul.f32 %v1421_v59, %v1182_v13  ;;  %v701_v13 = vperm.slane %v662_v25, %v1262_v23 }
 0x2e9   :  { %804 = vperm.xlu1 %977, %v761_v51   ;;  %v702_v32 = vsel %vm304_vm3, %v701_v13, %v700_v49  ;;  %v765_v51 = vmul.f32 %v1421_v59, %v1197_v30  ;;  %v769_v30 = vmul.f32 %v1421_v59, %v1184_v14  ;;  %v777_v14 = vmul.f32 %v1421_v59, %v1225_v50 }
 0x2ea   :  { %v712_v61 = vsel %vm338_vm6, %v702_v32, %v711_v41 }
 0x2ed   :  { %v671_v53 = vpop.permute.xlu1 %670 }
 0x2ee   :  { %v706_v56 = vperm.slane %v671_v53, %v1250_v4 }
 0x2f0   :  { %v707_v57 = vsel %vm300_vm1, %v706_v56, %v705_v58 }
 0x2f1   :  { %v709_v55 = vsel %vm304_vm3, %v708_v28, %v707_v57 }
 0x2f2   :  { %v713_v25 = vsel %vm340_vm7, %v709_v55, %v712_v61 }
 0x2f3   :  { %v715_v60 = vsel %vm343_vm8, %v713_v25, 0.0 }
 0x2f4   :  { %716 = vadd.xlane.f32.xlu2 %v715_v60 }
 0x2fd   :  { %v737_v46 = vpop.permute.xlu1 %736 }
 0x2fe   :  { %v760_v6 = vmul.f32 %v737_v46, %v1172_v1  ;;  %v764_v20 = vmul.f32 %v737_v46, %v1170_v0  ;;  %v772_v10 = vmul.f32 %v737_v46, %v1190_v21  ;;  %v768_v0 = vmul.f32 %v737_v46, %v1174_v2 }
 0x300   :  { %801 = vperm.xlu0 %976, %v760_v6  }
 0x30c   :  { %813 = vperm.xlu2 %970, %v764_v20  }
 0x30d   :  { %v749_v7 = vpop.permute.xlu1 %748 }
 0x30e   :  { %v762_v8 = vmul.f32 %v749_v7, %v1188_v19  ;;  %v774_v11 = vmul.f32 %v749_v7, %v1218_v44  ;;  %v766_v21 = vmul.f32 %v749_v7, %v1202_v33  ;;  %v773_v44 = vmul.f32 %v1421_v59, %v1221_v48 }
 0x30f   :  { %v770_v2 = vmul.f32 %v749_v7, %v1215_v42  ;;  %v778_v33 = vmul.f32 %v749_v7, %v1211_v39  ;;  %v719_v48 = vstv %s948_s1 }
 0x310   :  { %807 = vperm.xlu1 %977, %v762_v8  }
 0x314   :  { %837 = vperm.xlu2 %970, %v772_v10  }
 0x318   :  { %816 = vperm.xlu1 %977, %v765_v51  }
 0x31c   :  { %843 = vperm.xlu2 %970, %v774_v11  }
 0x31d   :  { %v755_v18 = vpop.permute.xlu1 %754 }
 0x31e   :  { %v763_v1 = vmul.f32 %v755_v18, %v1193_v27  ;;  %v775_v19 = vmul.f32 %v755_v18, %v1199_v31  ;;  %v767_v62 = vmul.f32 %v755_v18, %v1206_v36  ;;  %v776_v27 = vmul.f32 %v737_v46, %v1179_v9 }
 0x31f   :  { %v771_v31 = vmul.f32 %v755_v18, %v1209_v38  ;;  %v779_v36 = vmul.f32 %v755_v18, %v1228_v52 }
 0x320   :  { %810 = vperm.xlu0 %976, %v763_v1   ;;  %825 = vperm.xlu1 %977, %v768_v0  }
 0x324   :  { %846 = vperm.xlu2 %970, %v775_v19  }
 0x328   :  { %819 = vperm.xlu0 %976, %v766_v21   ;;  %822 = vperm.xlu1 %977, %v767_v62  }
 0x330   :  { %828 = vperm.xlu0 %976, %v769_v30   ;;  %840 = vperm.xlu1 %977, %v773_v44  }
 0x338   :  { %831 = vperm.xlu0 %976, %v770_v2   ;;  %849 = vperm.xlu1 %977, %v776_v27  }
 0x340   :  { %834 = vperm.xlu0 %976, %v771_v31   ;;  %855 = vperm.xlu1 %977, %v778_v33  }
 0x348   :  { %852 = vperm.xlu0 %976, %v777_v14  }
 0x350   :  { %858 = vperm.xlu0 %976, %v779_v36  }
 0x35b   :  { %v805_v24 = vpop.permute.xlu1 %804 }
 0x35c   :  { %v861_v8 = vperm.slane %v805_v24, %v1253_v5  ;;  %v904_v24 = vstv %s949_s9 }
 0x367   :  { %v717_v42 = vpop.xlane.xlu2 %716 }
 0x368   :  { %v720_v12 = vadd.f32 %v719_v48, %v717_v42 }
 0x36a   :  { %986 = vtanh.f32 %v720_v12 }
 0x36f   :  { %v814_v43 = vpop.permute.xlu2 %813 }
 0x370   :  { %v987_v9 = vpop.eup %986  ;;  %v867_v28 = vperm.slane %v814_v43, %v1247_v3 }
 0x371   :  { %v722_v15 = vsel %vm351_vm9, %v987_v9, 0.0 }
 0x372   :  { %v723_v38 = vrot.slane %v722_v15, 4  ;;  %v802_v13 = vpop.permute.xlu0 %801 }
 0x373   :  { %v860_v45 = vperm.slane %v802_v13, %v1247_v3 }
 0x374   :  { %v724_v54 = vadd.f32 %v723_v38, %v722_v15 }
 0x375   :  { %v862_v1 = vsel %vm296_vm2, %v861_v8, %v860_v45 }
 0x376   :  { %v725_v39 = vrot.slane %v724_v54, 2 }
 0x377   :  { %v838_v49 = vpop.permute.xlu2 %837 }
 0x378   :  { %v726_v63 = vadd.f32 %v725_v39, %v724_v54  ;;  %v881_v10 = vperm.slane %v838_v49, %v1247_v3 }
 0x37a   :  { %v727_v17 = vrot.slane %v726_v63, 1 }
 0x37c   :  { %v728_v50 = vadd.f32 %v727_v17, %v726_v63 }
 0x37e   :  { %v1483_v59 = vsel %vm917_vm11, %v1410_v29, %v728_v50 }
 0x37f   :  { %v844_v32 = vpop.permute.xlu2 %843 }
 0x380   :  { %v884_v62 = vperm.slane %v844_v32, %v1250_v4 }
 0x382   :  { %v808_v52 = vpop.permute.xlu1 %807 }
 0x383   :  { %v863_v46 = vperm.slane %v808_v52, %v1250_v4 }
 0x385   :  { %v864_v30 = vsel %vm300_vm1, %v863_v46, %v862_v1 }
 0x387   :  { %v847_v44 = vpop.permute.xlu2 %846 }
 0x388   :  { %v886_v48 = vperm.slane %v847_v44, %v1262_v23 }
 0x38a   :  { %v817_v22 = vpop.permute.xlu1 %816 }
 0x38b   :  { %v868_v58 = vperm.slane %v817_v22, %v1253_v5 }
 0x38d   :  { %v869_v41 = vsel %vm296_vm2, %v868_v58, %v867_v28 }
 0x392   :  { %v811_v16 = vpop.permute.xlu0 %810  ;;  %v826_v34 = vpop.permute.xlu1 %825 }
 0x393   :  { %v874_v6 = vperm.slane %v826_v34, %v1247_v3  ;;  %v865_v51 = vperm.slane %v811_v16, %v1262_v23 }
 0x39a   :  { %v820_v35 = vpop.permute.xlu0 %819  ;;  %v823_v47 = vpop.permute.xlu1 %822 }
 0x39b   :  { %v870_v29 = vperm.slane %v820_v35, %v1250_v4  ;;  %v872_v55 = vperm.slane %v823_v47, %v1262_v23 }
 0x39d   :  { %v871_v20 = vsel %vm300_vm1, %v870_v29, %v869_v41 }
 0x39e   :  { %v873_v0 = vsel %vm304_vm3, %v872_v55, %v871_v20 }
 0x3a2   :  { %v829_v37 = vpop.permute.xlu0 %828  ;;  %v841_v53 = vpop.permute.xlu1 %840 }
 0x3a3   :  { %v875_v57 = vperm.slane %v829_v37, %v1253_v5  ;;  %v882_v61 = vperm.slane %v841_v53, %v1253_v5 }
 0x3a5   :  { %v876_v11 = vsel %vm296_vm2, %v875_v57, %v874_v6  ;;  %v883_v19 = vsel %vm296_vm2, %v882_v61, %v881_v10 }
 0x3a6   :  { %v885_v33 = vsel %vm300_vm1, %v884_v62, %v883_v19 }
 0x3a7   :  { %v887_v15 = vsel %vm304_vm3, %v886_v48, %v885_v33 }
 0x3aa   :  { %v832_v26 = vpop.permute.xlu0 %831  ;;  %v850_v56 = vpop.permute.xlu1 %849 }
 0x3ab   :  { %v877_v25 = vperm.slane %v832_v26, %v1250_v4  ;;  %v888_v2 = vperm.slane %v850_v56, %v1247_v3 }
 0x3ad   :  { %v878_v21 = vsel %vm300_vm1, %v877_v25, %v876_v11 }
 0x3b2   :  { %v835_v40 = vpop.permute.xlu0 %834  ;;  %v856_v27 = vpop.permute.xlu1 %855 }
 0x3b3   :  { %v879_v7 = vperm.slane %v835_v40, %v1262_v23  ;;  %v891_v42 = vperm.slane %v856_v27, %v1250_v4  ;;  %v1032_v4 = vmov 0.0  }
 0x3b4   :  { %58 = vst.msk [vmem:[#allocation5] sm:$0x1] %vm57_vm12, %v1032_v4 }
 0x3b5   :  { %v880_v31 = vsel %vm304_vm3, %v879_v7, %v878_v21 }
 0x3ba   :  { %v853_v60 = vpop.permute.xlu0 %852 }
 0x3bb   :  { %v889_v18 = vperm.slane %v853_v60, %v1253_v5  ;;  %v866_v5 = vsel %vm304_vm3, %v865_v51, %v864_v30  ;;  %v914_v37 = vld [vmem:[#allocation5] sm:$0x1] }
 0x3bc   :  { %v895_v36 = vsel %vm334_vm4, %v873_v0, %v866_v5 }
 0x3bd   :  { %v890_v14 = vsel %vm296_vm2, %v889_v18, %v888_v2  ;;  %v896_v9 = vsel %vm336_vm5, %v880_v31, %v895_v36 }
 0x3be   :  { %v892_v38 = vsel %vm300_vm1, %v891_v42, %v890_v14  ;;  %v897_v39 = vsel %vm338_vm6, %v887_v15, %v896_v9 }
 0x3c2   :  { %v859_v12 = vpop.permute.xlu0 %858 }
 0x3c3   :  { %v893_v3 = vperm.slane %v859_v12, %v1262_v23 }
 0x3c5   :  { %v894_v54 = vsel %vm304_vm3, %v893_v3, %v892_v38 }
 0x3c6   :  { %v898_v63 = vsel %vm340_vm7, %v894_v54, %v897_v39 }
 0x3c7   :  { %v900_v17 = vsel %vm343_vm8, %v898_v63, 0.0 }
 0x3c8   :  { %901 = vadd.xlane.f32.xlu2 %v900_v17 }
 0x43b   :  { %v902_v23 = vpop.xlane.xlu2 %901 }
 0x43c   :  { %v905_v50 = vadd.f32 %v904_v24, %v902_v23 }
 0x43e   :  { %988 = vtanh.f32 %v905_v50 }
 0x444   :  { %v989_v52 = vpop.eup %988 }
 0x445   :  { %v907_v13 = vsel %vm351_vm9, %v989_v52, 0.0 }
 0x446   :  { %v908_v22 = vrot.slane %v907_v13, 4 }
 0x448   :  { %v909_v16 = vadd.f32 %v908_v22, %v907_v13 }
 0x44a   :  { %v910_v34 = vrot.slane %v909_v16, 2 }
 0x44c   :  { %v911_v35 = vadd.f32 %v910_v34, %v909_v16 }
 0x44e   :  { %v912_v43 = vrot.slane %v911_v35, 1 }
 0x450   :  { %v913_v47 = vadd.f32 %v912_v43, %v911_v35 }
 0x452   :  { %v920_v26 = vsel %vm919_vm13, %v1483_v59, %v913_v47 }
 0x453   :  { %v921_v49 = vadd.f32 %v920_v26, %v914_v37 }
 0x455   :  { %923 = vst.msk [vmem:[#allocation5] sm:$0x1] %vm57_vm12, %v921_v49 }
 0x456   :  { %934 = dma.vmem_to_hbm [thread:$0]  %s930_s11, 16, %s932_s14, [#allocation3]  }
 0x457   :  { %1028 = dma.done.wait [#allocation3], 16  }
 0x458   :  { %1029 = vsyncadd [#allocation3], 4294967280 }
 0x459   :  { %939 = vsyncpa [#allocation3], 1 }
 0x45a   :  { %940 = vsyncpa [#allocation4], 1 }

</bundles_post_ra>
